<compile_context>
chip_gen: v5e
topology: v5e:2x2
jax: 0.10.0
libtpu: 0.0.40
codegen_flags: <defaults>
</compile_context>

<pallas_src>
import numpy as np
import jax
import jax.numpy as jnp
from jax.experimental import pallas as pl
from jax.experimental.pallas import tpu as pltpu

_LN_EPS = 1e-5                      # nn.LayerNorm default
_SQRT_2_OVER_PI = 0.7978845608028654


def _layer_norm(v, w, b):
    # v: (N, D), w/b: (1, D)
    mu = jnp.mean(v, axis=-1, keepdims=True)
    var = jnp.mean(jnp.square(v - mu), axis=-1, keepdims=True)
    return (v - mu) * jax.lax.rsqrt(var + _LN_EPS) * w + b


def _gelu_tanh(v):
    # TODO(synk): PyTorch nn.GELU() defaults to the exact erf form; the tanh
    # approximation is used for guaranteed Mosaic lowering (|diff| ~1e-3).
    return 0.5 * v * (1.0 + jnp.tanh(_SQRT_2_OVER_PI * (v + 0.044715 * v * v * v)))


def _encoder_layer_kernel(x_ref, ln1w_ref, ln1b_ref, wqkv_ref, bqkv_ref,
                          wo_ref, bo_ref, ln2w_ref, ln2b_ref,
                          w1_ref, b1_ref, w2_ref, b2_ref, o_ref):
    x = x_ref[0].astype(jnp.float32)          # (N, D) current batch element
    D = x.shape[-1]
    H = wo_ref.shape[0] // D                  # num_heads (static)
    inv_scale = 1.0 / (D ** 0.5)              # AttentionHead: / d_model**0.5

    wqkv = wqkv_ref[...]                      # (D, H*3*D)
    bqkv = bqkv_ref[...]                      # (1, H*3*D)
    wo = wo_ref[...]                          # (H*D, D)
    w1 = w1_ref[...]                          # (D, D*ratio)
    w2 = w2_ref[...]                          # (D*ratio, D)

    # ---------------- attention branch ----------------
    h = _layer_norm(x, ln1w_ref[...], ln1b_ref[...])

    # One lane-dense QKV matmul for all heads: (N, D) @ (D, H*3*D)
    qkv = jnp.dot(h, wqkv, preferred_element_type=jnp.float32) + bqkv

    attn = jnp.zeros_like(x)
    for head in range(H):                     # static unroll, H is tiny
        base = head * 3 * D
        q = qkv[:, base:base + D]
        k = qkv[:, base + D:base + 2 * D]
        v = qkv[:, base + 2 * D:base + 3 * D]
        # scores = Q @ K^T / sqrt(D)  (contract last dims, no explicit transpose)
        s = jax.lax.dot_general(q, k, (((1,), (1,)), ((), ())),
                                preferred_element_type=jnp.float32) * inv_scale
        s = s - jnp.max(s, axis=-1, keepdims=True)
        p = jnp.exp(s)
        p = p / jnp.sum(p, axis=-1, keepdims=True)
        a = jnp.dot(p, v, preferred_element_type=jnp.float32)         # (N, D)
        # concat-over-heads followed by Linear(H*D, D)
        #   ==  sum_h  a_h @ Wo[h*D:(h+1)*D, :]
        attn = attn + jnp.dot(a, wo[head * D:(head + 1) * D, :],
                              preferred_element_type=jnp.float32)
    attn = attn + bo_ref[...]

    out1 = x + attn                           # dropout1 == identity (inference)

    # ---------------- feed-forward branch ----------------
    h2 = _layer_norm(out1, ln2w_ref[...], ln2b_ref[...])
    f = jnp.dot(h2, w1, preferred_element_type=jnp.float32) + b1_ref[...]
    g = _gelu_tanh(f)
    f2 = jnp.dot(g, w2, preferred_element_type=jnp.float32) + b2_ref[...]

    o_ref[0] = (out1 + f2).astype(o_ref.dtype)   # dropout2 == identity


def encoder_layer(x, params):
    """x: (B, N, D) -> (B, N, D). Fully fused transformer encoder layer."""
    B, N, D = x.shape
    H = params["w_o"].shape[0] // D
    d_hidden = params["w1"].shape[1]

    def full(shape):
        # Weight tile == full array, constant index_map -> stays resident in VMEM.
        return pl.BlockSpec(shape, lambda b, _n=len(shape): (0,) * _n)

    grid_spec = pltpu.PrefetchScalarGridSpec(
        num_scalar_prefetch=0,
        grid=(B,),
        in_specs=[
            pl.BlockSpec((1, N, D), lambda b: (b, 0, 0)),   # x
            full((1, D)), full((1, D)),                     # ln1 w, b
            full((D, 3 * D * H)), full((1, 3 * D * H)),     # qkv W, b (all heads)
            full((H * D, D)), full((1, D)),                 # out-proj W, b
            full((1, D)), full((1, D)),                     # ln2 w, b
            full((D, d_hidden)), full((1, d_hidden)),       # ffn W1, b1
            full((d_hidden, D)), full((1, D)),              # ffn W2, b2
        ],
        out_specs=pl.BlockSpec((1, N, D), lambda b: (b, 0, 0)),
    )

    return pl.pallas_call(
        _encoder_layer_kernel,
        out_shape=jax.ShapeDtypeStruct((B, N, D), x.dtype),
        grid_spec=grid_spec,
        compiler_params=pltpu.CompilerParams(
            dimension_semantics=("parallel",)),     # v7x: shard batch across TCs
    )(x,
      params["ln1_w"], params["ln1_b"],
      params["w_qkv"], params["b_qkv"],
      params["w_o"], params["b_o"],
      params["ln2_w"], params["ln2_b"],
      params["w1"], params["b1"],
      params["w2"], params["b2"])


# ------------- plain-JAX reference (same semantics as the PyTorch forward) -------------
def _encoder_layer_ref(x, params):
    D = x.shape[-1]
    H = params["w_o"].shape[0] // D

    def ln(v, w, b):
        mu = jnp.mean(v, axis=-1, keepdims=True)
        var = jnp.mean(jnp.square(v - mu), axis=-1, keepdims=True)
        return (v - mu) * jax.lax.rsqrt(var + _LN_EPS) * w + b

    h = ln(x, params["ln1_w"][0], params["ln1_b"][0])
    qkv = h @ params["w_qkv"] + params["b_qkv"][0]          # (B, N, H*3*D)
    attn = jnp.zeros_like(x)
    for hd in range(H):
        base = hd * 3 * D
        q = qkv[..., base:base + D]
        k = qkv[..., base + D:base + 2 * D]
        v = qkv[..., base + 2 * D:base + 3 * D]
        s = jnp.einsum('bnd,bmd->bnm', q, k) / (D ** 0.5)
        p = jax.nn.softmax(s, axis=-1)
        a = jnp.einsum('bnm,bmd->bnd', p, v)
        attn = attn + a @ params["w_o"][hd * D:(hd + 1) * D, :]
    out1 = x + attn + params["b_o"][0]
    h2 = ln(out1, params["ln2_w"][0], params["ln2_b"][0])
    f = h2 @ params["w1"] + params["b1"][0]
    g = _gelu_tanh(f)
    return out1 + g @ params["w2"] + params["b2"][0]


if __name__ == "__main__":
    # Small shapes consistent with the module: batch=2, seq=8, d_model=32,
    # num_heads=4, d_ratio=4.
    B, N, d_model, num_heads, d_ratio = 2, 8, 32, 4, 4
    D, H = d_model, num_heads

    key = jax.random.PRNGKey(0)
    keys = jax.random.split(key, 9)
    s = 0.05  # small deterministic init

    params = dict(
        ln1_w=jnp.ones((1, D), jnp.float32),
        ln1_b=jnp.zeros((1, D), jnp.float32),
        w_qkv=s * jax.random.normal(keys[0], (D, H * 3 * D), jnp.float32),
        b_qkv=s * jax.random.normal(keys[1], (1, H * 3 * D), jnp.float32),
        w_o=s * jax.random.normal(keys[2], (H * D, D), jnp.float32),
        b_o=s * jax.random.normal(keys[3], (1, D), jnp.float32),
        ln2_w=jnp.ones((1, D), jnp.float32),
        ln2_b=jnp.zeros((1, D), jnp.float32),
        w1=s * jax.random.normal(keys[4], (D, D * d_ratio), jnp.float32),
        b1=s * jax.random.normal(keys[5], (1, D * d_ratio), jnp.float32),
        w2=s * jax.random.normal(keys[6], (D * d_ratio, D), jnp.float32),
        b2=s * jax.random.normal(keys[7], (1, D), jnp.float32),
    )
    x = jax.random.normal(keys[8], (B, N, D), jnp.float32)

    out = encoder_layer(x, params)
    out = jax.block_until_ready(out)

    ref = _encoder_layer_ref(x, params)
    np.testing.assert_allclose(np.asarray(out), np.asarray(ref), rtol=1e-4, atol=1e-4)
    assert out.shape == (B, N, D)

    print("KERNEL_OK")
</pallas_src>

<mosaic_0001>
module attributes {stable_mosaic.version = 11 : i64} {
  func.func @_encoder_layer_kernel(%arg0: i32, %arg1: memref<1x8x32xf32, #tpu.memory_space<vmem>>, %arg2: memref<1x32xf32, #tpu.memory_space<vmem>>, %arg3: memref<1x32xf32, #tpu.memory_space<vmem>>, %arg4: memref<32x384xf32, #tpu.memory_space<vmem>>, %arg5: memref<1x384xf32, #tpu.memory_space<vmem>>, %arg6: memref<128x32xf32, #tpu.memory_space<vmem>>, %arg7: memref<1x32xf32, #tpu.memory_space<vmem>>, %arg8: memref<1x32xf32, #tpu.memory_space<vmem>>, %arg9: memref<1x32xf32, #tpu.memory_space<vmem>>, %arg10: memref<32x128xf32, #tpu.memory_space<vmem>>, %arg11: memref<1x128xf32, #tpu.memory_space<vmem>>, %arg12: memref<128x32xf32, #tpu.memory_space<vmem>>, %arg13: memref<1x32xf32, #tpu.memory_space<vmem>>, %arg14: memref<1x8x32xf32, #tpu.memory_space<vmem>>) attributes {dimension_semantics = [#tpu.dimension_semantics<parallel>], iteration_bounds = array<i64: 2>, scalar_prefetch = 0 : i64, scratch_operands = 0 : i64, tpu.core_type = #tpu.core_type<tc>, window_params = [{transform_indices = @transform_0, window_bounds = array<i64: 1, 8, 32>}, {pipeline_mode = #tpu.pipeline_mode<synchronous>, transform_indices = @transform_1, window_bounds = array<i64: 1, 32>}, {pipeline_mode = #tpu.pipeline_mode<synchronous>, transform_indices = @transform_2, window_bounds = array<i64: 1, 32>}, {pipeline_mode = #tpu.pipeline_mode<synchronous>, transform_indices = @transform_3, window_bounds = array<i64: 32, 384>}, {pipeline_mode = #tpu.pipeline_mode<synchronous>, transform_indices = @transform_4, window_bounds = array<i64: 1, 384>}, {pipeline_mode = #tpu.pipeline_mode<synchronous>, transform_indices = @transform_5, window_bounds = array<i64: 128, 32>}, {pipeline_mode = #tpu.pipeline_mode<synchronous>, transform_indices = @transform_6, window_bounds = array<i64: 1, 32>}, {pipeline_mode = #tpu.pipeline_mode<synchronous>, transform_indices = @transform_7, window_bounds = array<i64: 1, 32>}, {pipeline_mode = #tpu.pipeline_mode<synchronous>, transform_indices = @transform_8, window_bounds = array<i64: 1, 32>}, {pipeline_mode = #tpu.pipeline_mode<synchronous>, transform_indices = @transform_9, window_bounds = array<i64: 32, 128>}, {pipeline_mode = #tpu.pipeline_mode<synchronous>, transform_indices = @transform_10, window_bounds = array<i64: 1, 128>}, {pipeline_mode = #tpu.pipeline_mode<synchronous>, transform_indices = @transform_11, window_bounds = array<i64: 128, 32>}, {pipeline_mode = #tpu.pipeline_mode<synchronous>, transform_indices = @transform_12, window_bounds = array<i64: 1, 32>}, {transform_indices = @transform_13, window_bounds = array<i64: 1, 8, 32>}]} {
    %c0 = arith.constant 0 : index
    %c0_0 = arith.constant 0 : index
    %c0_1 = arith.constant 0 : index
    %0 = vector.load %arg1[%c0, %c0_0, %c0_1] : memref<1x8x32xf32, #tpu.memory_space<vmem>>, vector<1x8x32xf32>
    %1 = vector.shape_cast %0 : vector<1x8x32xf32> to vector<8x32xf32>
    %c0_2 = arith.constant 0 : index
    %c0_3 = arith.constant 0 : index
    %2 = vector.load %arg4[%c0_2, %c0_3] : memref<32x384xf32, #tpu.memory_space<vmem>>, vector<32x384xf32>
    %c0_4 = arith.constant 0 : index
    %c0_5 = arith.constant 0 : index
    %3 = vector.load %arg5[%c0_4, %c0_5] : memref<1x384xf32, #tpu.memory_space<vmem>>, vector<1x384xf32>
    %c0_6 = arith.constant 0 : index
    %c0_7 = arith.constant 0 : index
    %4 = vector.load %arg6[%c0_6, %c0_7] : memref<128x32xf32, #tpu.memory_space<vmem>>, vector<128x32xf32>
    %c0_8 = arith.constant 0 : index
    %c0_9 = arith.constant 0 : index
    %5 = vector.load %arg10[%c0_8, %c0_9] : memref<32x128xf32, #tpu.memory_space<vmem>>, vector<32x128xf32>
    %c0_10 = arith.constant 0 : index
    %c0_11 = arith.constant 0 : index
    %6 = vector.load %arg12[%c0_10, %c0_11] : memref<128x32xf32, #tpu.memory_space<vmem>>, vector<128x32xf32>
    %c0_12 = arith.constant 0 : index
    %c0_13 = arith.constant 0 : index
    %7 = vector.load %arg2[%c0_12, %c0_13] : memref<1x32xf32, #tpu.memory_space<vmem>>, vector<1x32xf32>
    %c0_14 = arith.constant 0 : index
    %c0_15 = arith.constant 0 : index
    %8 = vector.load %arg3[%c0_14, %c0_15] : memref<1x32xf32, #tpu.memory_space<vmem>>, vector<1x32xf32>
    %cst = arith.constant dense<0.000000e+00> : vector<8xf32>
    %9 = vector.multi_reduction <add>, %1, %cst [1] : vector<8x32xf32> to vector<8xf32>
    %10 = vector.shape_cast %9 : vector<8xf32> to vector<8x1xf32>
    %cst_16 = arith.constant 3.200000e+01 : f32
    %11 = vector.broadcast %cst_16 : f32 to vector<8x1xf32>
    %12 = arith.divf %10, %11 : vector<8x1xf32>
    %13 = vector.broadcast %12 : vector<8x1xf32> to vector<8x32xf32>
    %14 = arith.subf %1, %13 : vector<8x32xf32>
    %15 = arith.mulf %14, %14 : vector<8x32xf32>
    %cst_17 = arith.constant dense<0.000000e+00> : vector<8xf32>
    %16 = vector.multi_reduction <add>, %15, %cst_17 [1] : vector<8x32xf32> to vector<8xf32>
    %17 = vector.shape_cast %16 : vector<8xf32> to vector<8x1xf32>
    %cst_18 = arith.constant 3.200000e+01 : f32
    %18 = vector.broadcast %cst_18 : f32 to vector<8x1xf32>
    %19 = arith.divf %17, %18 : vector<8x1xf32>
    %20 = vector.broadcast %12 : vector<8x1xf32> to vector<8x32xf32>
    %21 = arith.subf %1, %20 : vector<8x32xf32>
    %cst_19 = arith.constant 9.99999974E-6 : f32
    %22 = vector.broadcast %cst_19 : f32 to vector<8x1xf32>
    %23 = arith.addf %19, %22 : vector<8x1xf32>
    %24 = math.rsqrt %23 : vector<8x1xf32>
    %25 = vector.broadcast %24 : vector<8x1xf32> to vector<8x32xf32>
    %26 = arith.mulf %21, %25 : vector<8x32xf32>
    %27 = vector.broadcast %7 : vector<1x32xf32> to vector<8x32xf32>
    %28 = arith.mulf %26, %27 : vector<8x32xf32>
    %29 = vector.broadcast %8 : vector<1x32xf32> to vector<8x32xf32>
    %30 = arith.addf %28, %29 : vector<8x32xf32>
    %cst_20 = arith.constant dense<0.000000e+00> : vector<8x384xf32>
    %31 = tpu.matmul %30, %2, %cst_20 {dimension_numbers = #tpu.dot_dimension_numbers<[1], [0], [0], [1], [0, 0, 1, 1], [], []>} : vector<8x32xf32>, vector<32x384xf32>, vector<8x384xf32> -> vector<8x384xf32>
    %32 = vector.broadcast %3 : vector<1x384xf32> to vector<8x384xf32>
    %33 = arith.addf %31, %32 : vector<8x384xf32>
    %cst_21 = arith.constant 0.000000e+00 : f32
    %34 = vector.broadcast %cst_21 : f32 to vector<8x32xf32>
    %35 = vector.extract_strided_slice %33 {offsets = [0, 0], sizes = [8, 32], strides = [1, 1]} : vector<8x384xf32> to vector<8x32xf32>
    %36 = vector.extract_strided_slice %33 {offsets = [0, 32], sizes = [8, 32], strides = [1, 1]} : vector<8x384xf32> to vector<8x32xf32>
    %37 = vector.extract_strided_slice %33 {offsets = [0, 64], sizes = [8, 32], strides = [1, 1]} : vector<8x384xf32> to vector<8x32xf32>
    %cst_22 = arith.constant dense<0.000000e+00> : vector<8x8xf32>
    %38 = tpu.matmul %35, %36, %cst_22 {dimension_numbers = #tpu.dot_dimension_numbers<[1], [1], [0], [0], [0, 0, 1, 0], [], []>} : vector<8x32xf32>, vector<8x32xf32>, vector<8x8xf32> -> vector<8x8xf32>
    %cst_23 = arith.constant 0.176776692 : f32
    %39 = vector.broadcast %cst_23 : f32 to vector<8x8xf32>
    %40 = arith.mulf %38, %39 : vector<8x8xf32>
    %cst_24 = arith.constant dense<0xFF800000> : vector<8xf32>
    %41 = vector.multi_reduction <maximumf>, %40, %cst_24 [1] : vector<8x8xf32> to vector<8xf32>
    %42 = vector.shape_cast %41 : vector<8xf32> to vector<8x1xf32>
    %43 = vector.broadcast %42 : vector<8x1xf32> to vector<8x8xf32>
    %44 = arith.subf %40, %43 : vector<8x8xf32>
    %45 = math.exp %44 : vector<8x8xf32>
    %cst_25 = arith.constant dense<0.000000e+00> : vector<8xf32>
    %46 = vector.multi_reduction <add>, %45, %cst_25 [1] : vector<8x8xf32> to vector<8xf32>
    %47 = vector.shape_cast %46 : vector<8xf32> to vector<8x1xf32>
    %48 = vector.broadcast %47 : vector<8x1xf32> to vector<8x8xf32>
    %49 = arith.divf %45, %48 : vector<8x8xf32>
    %cst_26 = arith.constant dense<0.000000e+00> : vector<8x32xf32>
    %50 = tpu.matmul %49, %37, %cst_26 {dimension_numbers = #tpu.dot_dimension_numbers<[1], [0], [0], [1], [0, 0, 1, 1], [], []>} : vector<8x8xf32>, vector<8x32xf32>, vector<8x32xf32> -> vector<8x32xf32>
    %51 = vector.extract_strided_slice %4 {offsets = [0, 0], sizes = [32, 32], strides = [1, 1]} : vector<128x32xf32> to vector<32x32xf32>
    %cst_27 = arith.constant dense<0.000000e+00> : vector<8x32xf32>
    %52 = tpu.matmul %50, %51, %cst_27 {dimension_numbers = #tpu.dot_dimension_numbers<[1], [0], [0], [1], [0, 0, 1, 1], [], []>} : vector<8x32xf32>, vector<32x32xf32>, vector<8x32xf32> -> vector<8x32xf32>
    %53 = arith.addf %34, %52 : vector<8x32xf32>
    %54 = vector.extract_strided_slice %33 {offsets = [0, 96], sizes = [8, 32], strides = [1, 1]} : vector<8x384xf32> to vector<8x32xf32>
    %55 = vector.extract_strided_slice %33 {offsets = [0, 128], sizes = [8, 32], strides = [1, 1]} : vector<8x384xf32> to vector<8x32xf32>
    %56 = vector.extract_strided_slice %33 {offsets = [0, 160], sizes = [8, 32], strides = [1, 1]} : vector<8x384xf32> to vector<8x32xf32>
    %cst_28 = arith.constant dense<0.000000e+00> : vector<8x8xf32>
    %57 = tpu.matmul %54, %55, %cst_28 {dimension_numbers = #tpu.dot_dimension_numbers<[1], [1], [0], [0], [0, 0, 1, 0], [], []>} : vector<8x32xf32>, vector<8x32xf32>, vector<8x8xf32> -> vector<8x8xf32>
    %cst_29 = arith.constant 0.176776692 : f32
    %58 = vector.broadcast %cst_29 : f32 to vector<8x8xf32>
    %59 = arith.mulf %57, %58 : vector<8x8xf32>
    %cst_30 = arith.constant dense<0xFF800000> : vector<8xf32>
    %60 = vector.multi_reduction <maximumf>, %59, %cst_30 [1] : vector<8x8xf32> to vector<8xf32>
    %61 = vector.shape_cast %60 : vector<8xf32> to vector<8x1xf32>
    %62 = vector.broadcast %61 : vector<8x1xf32> to vector<8x8xf32>
    %63 = arith.subf %59, %62 : vector<8x8xf32>
    %64 = math.exp %63 : vector<8x8xf32>
    %cst_31 = arith.constant dense<0.000000e+00> : vector<8xf32>
    %65 = vector.multi_reduction <add>, %64, %cst_31 [1] : vector<8x8xf32> to vector<8xf32>
    %66 = vector.shape_cast %65 : vector<8xf32> to vector<8x1xf32>
    %67 = vector.broadcast %66 : vector<8x1xf32> to vector<8x8xf32>
    %68 = arith.divf %64, %67 : vector<8x8xf32>
    %cst_32 = arith.constant dense<0.000000e+00> : vector<8x32xf32>
    %69 = tpu.matmul %68, %56, %cst_32 {dimension_numbers = #tpu.dot_dimension_numbers<[1], [0], [0], [1], [0, 0, 1, 1], [], []>} : vector<8x8xf32>, vector<8x32xf32>, vector<8x32xf32> -> vector<8x32xf32>
    %70 = vector.extract_strided_slice %4 {offsets = [32, 0], sizes = [32, 32], strides = [1, 1]} : vector<128x32xf32> to vector<32x32xf32>
    %cst_33 = arith.constant dense<0.000000e+00> : vector<8x32xf32>
    %71 = tpu.matmul %69, %70, %cst_33 {dimension_numbers = #tpu.dot_dimension_numbers<[1], [0], [0], [1], [0, 0, 1, 1], [], []>} : vector<8x32xf32>, vector<32x32xf32>, vector<8x32xf32> -> vector<8x32xf32>
    %72 = arith.addf %53, %71 : vector<8x32xf32>
    %73 = vector.extract_strided_slice %33 {offsets = [0, 192], sizes = [8, 32], strides = [1, 1]} : vector<8x384xf32> to vector<8x32xf32>
    %74 = vector.extract_strided_slice %33 {offsets = [0, 224], sizes = [8, 32], strides = [1, 1]} : vector<8x384xf32> to vector<8x32xf32>
    %75 = vector.extract_strided_slice %33 {offsets = [0, 256], sizes = [8, 32], strides = [1, 1]} : vector<8x384xf32> to vector<8x32xf32>
    %cst_34 = arith.constant dense<0.000000e+00> : vector<8x8xf32>
    %76 = tpu.matmul %73, %74, %cst_34 {dimension_numbers = #tpu.dot_dimension_numbers<[1], [1], [0], [0], [0, 0, 1, 0], [], []>} : vector<8x32xf32>, vector<8x32xf32>, vector<8x8xf32> -> vector<8x8xf32>
    %cst_35 = arith.constant 0.176776692 : f32
    %77 = vector.broadcast %cst_35 : f32 to vector<8x8xf32>
    %78 = arith.mulf %76, %77 : vector<8x8xf32>
    %cst_36 = arith.constant dense<0xFF800000> : vector<8xf32>
    %79 = vector.multi_reduction <maximumf>, %78, %cst_36 [1] : vector<8x8xf32> to vector<8xf32>
    %80 = vector.shape_cast %79 : vector<8xf32> to vector<8x1xf32>
    %81 = vector.broadcast %80 : vector<8x1xf32> to vector<8x8xf32>
    %82 = arith.subf %78, %81 : vector<8x8xf32>
    %83 = math.exp %82 : vector<8x8xf32>
    %cst_37 = arith.constant dense<0.000000e+00> : vector<8xf32>
    %84 = vector.multi_reduction <add>, %83, %cst_37 [1] : vector<8x8xf32> to vector<8xf32>
    %85 = vector.shape_cast %84 : vector<8xf32> to vector<8x1xf32>
    %86 = vector.broadcast %85 : vector<8x1xf32> to vector<8x8xf32>
    %87 = arith.divf %83, %86 : vector<8x8xf32>
    %cst_38 = arith.constant dense<0.000000e+00> : vector<8x32xf32>
    %88 = tpu.matmul %87, %75, %cst_38 {dimension_numbers = #tpu.dot_dimension_numbers<[1], [0], [0], [1], [0, 0, 1, 1], [], []>} : vector<8x8xf32>, vector<8x32xf32>, vector<8x32xf32> -> vector<8x32xf32>
    %89 = vector.extract_strided_slice %4 {offsets = [64, 0], sizes = [32, 32], strides = [1, 1]} : vector<128x32xf32> to vector<32x32xf32>
    %cst_39 = arith.constant dense<0.000000e+00> : vector<8x32xf32>
    %90 = tpu.matmul %88, %89, %cst_39 {dimension_numbers = #tpu.dot_dimension_numbers<[1], [0], [0], [1], [0, 0, 1, 1], [], []>} : vector<8x32xf32>, vector<32x32xf32>, vector<8x32xf32> -> vector<8x32xf32>
    %91 = arith.addf %72, %90 : vector<8x32xf32>
    %92 = vector.extract_strided_slice %33 {offsets = [0, 288], sizes = [8, 32], strides = [1, 1]} : vector<8x384xf32> to vector<8x32xf32>
    %93 = vector.extract_strided_slice %33 {offsets = [0, 320], sizes = [8, 32], strides = [1, 1]} : vector<8x384xf32> to vector<8x32xf32>
    %94 = vector.extract_strided_slice %33 {offsets = [0, 352], sizes = [8, 32], strides = [1, 1]} : vector<8x384xf32> to vector<8x32xf32>
    %cst_40 = arith.constant dense<0.000000e+00> : vector<8x8xf32>
    %95 = tpu.matmul %92, %93, %cst_40 {dimension_numbers = #tpu.dot_dimension_numbers<[1], [1], [0], [0], [0, 0, 1, 0], [], []>} : vector<8x32xf32>, vector<8x32xf32>, vector<8x8xf32> -> vector<8x8xf32>
    %cst_41 = arith.constant 0.176776692 : f32
    %96 = vector.broadcast %cst_41 : f32 to vector<8x8xf32>
    %97 = arith.mulf %95, %96 : vector<8x8xf32>
    %cst_42 = arith.constant dense<0xFF800000> : vector<8xf32>
    %98 = vector.multi_reduction <maximumf>, %97, %cst_42 [1] : vector<8x8xf32> to vector<8xf32>
    %99 = vector.shape_cast %98 : vector<8xf32> to vector<8x1xf32>
    %100 = vector.broadcast %99 : vector<8x1xf32> to vector<8x8xf32>
    %101 = arith.subf %97, %100 : vector<8x8xf32>
    %102 = math.exp %101 : vector<8x8xf32>
    %cst_43 = arith.constant dense<0.000000e+00> : vector<8xf32>
    %103 = vector.multi_reduction <add>, %102, %cst_43 [1] : vector<8x8xf32> to vector<8xf32>
    %104 = vector.shape_cast %103 : vector<8xf32> to vector<8x1xf32>
    %105 = vector.broadcast %104 : vector<8x1xf32> to vector<8x8xf32>
    %106 = arith.divf %102, %105 : vector<8x8xf32>
    %cst_44 = arith.constant dense<0.000000e+00> : vector<8x32xf32>
    %107 = tpu.matmul %106, %94, %cst_44 {dimension_numbers = #tpu.dot_dimension_numbers<[1], [0], [0], [1], [0, 0, 1, 1], [], []>} : vector<8x8xf32>, vector<8x32xf32>, vector<8x32xf32> -> vector<8x32xf32>
    %108 = vector.extract_strided_slice %4 {offsets = [96, 0], sizes = [32, 32], strides = [1, 1]} : vector<128x32xf32> to vector<32x32xf32>
    %cst_45 = arith.constant dense<0.000000e+00> : vector<8x32xf32>
    %109 = tpu.matmul %107, %108, %cst_45 {dimension_numbers = #tpu.dot_dimension_numbers<[1], [0], [0], [1], [0, 0, 1, 1], [], []>} : vector<8x32xf32>, vector<32x32xf32>, vector<8x32xf32> -> vector<8x32xf32>
    %110 = arith.addf %91, %109 : vector<8x32xf32>
    %c0_46 = arith.constant 0 : index
    %c0_47 = arith.constant 0 : index
    %111 = vector.load %arg7[%c0_46, %c0_47] : memref<1x32xf32, #tpu.memory_space<vmem>>, vector<1x32xf32>
    %112 = vector.broadcast %111 : vector<1x32xf32> to vector<8x32xf32>
    %113 = arith.addf %110, %112 : vector<8x32xf32>
    %114 = arith.addf %1, %113 : vector<8x32xf32>
    %c0_48 = arith.constant 0 : index
    %c0_49 = arith.constant 0 : index
    %115 = vector.load %arg8[%c0_48, %c0_49] : memref<1x32xf32, #tpu.memory_space<vmem>>, vector<1x32xf32>
    %c0_50 = arith.constant 0 : index
    %c0_51 = arith.constant 0 : index
    %116 = vector.load %arg9[%c0_50, %c0_51] : memref<1x32xf32, #tpu.memory_space<vmem>>, vector<1x32xf32>
    %cst_52 = arith.constant dense<0.000000e+00> : vector<8xf32>
    %117 = vector.multi_reduction <add>, %114, %cst_52 [1] : vector<8x32xf32> to vector<8xf32>
    %118 = vector.shape_cast %117 : vector<8xf32> to vector<8x1xf32>
    %cst_53 = arith.constant 3.200000e+01 : f32
    %119 = vector.broadcast %cst_53 : f32 to vector<8x1xf32>
    %120 = arith.divf %118, %119 : vector<8x1xf32>
    %121 = vector.broadcast %120 : vector<8x1xf32> to vector<8x32xf32>
    %122 = arith.subf %114, %121 : vector<8x32xf32>
    %123 = arith.mulf %122, %122 : vector<8x32xf32>
    %cst_54 = arith.constant dense<0.000000e+00> : vector<8xf32>
    %124 = vector.multi_reduction <add>, %123, %cst_54 [1] : vector<8x32xf32> to vector<8xf32>
    %125 = vector.shape_cast %124 : vector<8xf32> to vector<8x1xf32>
    %cst_55 = arith.constant 3.200000e+01 : f32
    %126 = vector.broadcast %cst_55 : f32 to vector<8x1xf32>
    %127 = arith.divf %125, %126 : vector<8x1xf32>
    %128 = vector.broadcast %120 : vector<8x1xf32> to vector<8x32xf32>
    %129 = arith.subf %114, %128 : vector<8x32xf32>
    %cst_56 = arith.constant 9.99999974E-6 : f32
    %130 = vector.broadcast %cst_56 : f32 to vector<8x1xf32>
    %131 = arith.addf %127, %130 : vector<8x1xf32>
    %132 = math.rsqrt %131 : vector<8x1xf32>
    %133 = vector.broadcast %132 : vector<8x1xf32> to vector<8x32xf32>
    %134 = arith.mulf %129, %133 : vector<8x32xf32>
    %135 = vector.broadcast %115 : vector<1x32xf32> to vector<8x32xf32>
    %136 = arith.mulf %134, %135 : vector<8x32xf32>
    %137 = vector.broadcast %116 : vector<1x32xf32> to vector<8x32xf32>
    %138 = arith.addf %136, %137 : vector<8x32xf32>
    %cst_57 = arith.constant dense<0.000000e+00> : vector<8x128xf32>
    %139 = tpu.matmul %138, %5, %cst_57 {dimension_numbers = #tpu.dot_dimension_numbers<[1], [0], [0], [1], [0, 0, 1, 1], [], []>} : vector<8x32xf32>, vector<32x128xf32>, vector<8x128xf32> -> vector<8x128xf32>
    %c0_58 = arith.constant 0 : index
    %c0_59 = arith.constant 0 : index
    %140 = vector.load %arg11[%c0_58, %c0_59] : memref<1x128xf32, #tpu.memory_space<vmem>>, vector<1x128xf32>
    %141 = vector.broadcast %140 : vector<1x128xf32> to vector<8x128xf32>
    %142 = arith.addf %139, %141 : vector<8x128xf32>
    %cst_60 = arith.constant 5.000000e-01 : f32
    %143 = vector.broadcast %cst_60 : f32 to vector<8x128xf32>
    %144 = arith.mulf %143, %142 : vector<8x128xf32>
    %cst_61 = arith.constant 4.471500e-02 : f32
    %145 = vector.broadcast %cst_61 : f32 to vector<8x128xf32>
    %146 = arith.mulf %145, %142 : vector<8x128xf32>
    %147 = arith.mulf %146, %142 : vector<8x128xf32>
    %148 = arith.mulf %147, %142 : vector<8x128xf32>
    %149 = arith.addf %142, %148 : vector<8x128xf32>
    %cst_62 = arith.constant 0.797884583 : f32
    %150 = vector.broadcast %cst_62 : f32 to vector<8x128xf32>
    %151 = arith.mulf %150, %149 : vector<8x128xf32>
    %152 = math.tanh %151 : vector<8x128xf32>
    %cst_63 = arith.constant 1.000000e+00 : f32
    %153 = vector.broadcast %cst_63 : f32 to vector<8x128xf32>
    %154 = arith.addf %153, %152 : vector<8x128xf32>
    %155 = arith.mulf %144, %154 : vector<8x128xf32>
    %cst_64 = arith.constant dense<0.000000e+00> : vector<8x32xf32>
    %156 = tpu.matmul %155, %6, %cst_64 {dimension_numbers = #tpu.dot_dimension_numbers<[1], [0], [0], [1], [0, 0, 1, 1], [], []>} : vector<8x128xf32>, vector<128x32xf32>, vector<8x32xf32> -> vector<8x32xf32>
    %c0_65 = arith.constant 0 : index
    %c0_66 = arith.constant 0 : index
    %157 = vector.load %arg13[%c0_65, %c0_66] : memref<1x32xf32, #tpu.memory_space<vmem>>, vector<1x32xf32>
    %158 = vector.broadcast %157 : vector<1x32xf32> to vector<8x32xf32>
    %159 = arith.addf %156, %158 : vector<8x32xf32>
    %160 = arith.addf %114, %159 : vector<8x32xf32>
    %c0_67 = arith.constant 0 : index
    %c0_68 = arith.constant 0 : index
    %c0_69 = arith.constant 0 : index
    %161 = vector.load %arg14[%c0_67, %c0_68, %c0_69] : memref<1x8x32xf32, #tpu.memory_space<vmem>>, vector<1x8x32xf32>
    %162 = vector.shape_cast %161 : vector<1x8x32xf32> to vector<8x32xf32>
    %163 = vector.shape_cast %160 : vector<8x32xf32> to vector<1x8x32xf32>
    tpu.vector_store %arg14[%c0_67, %c0_68, %c0_69], %163 {strides = array<i32>} : memref<1x8x32xf32, #tpu.memory_space<vmem>>, vector<1x8x32xf32>,
    return
  }
  func.func @transform_0(%arg0: i32) -> (i32, i32, i32) {
    %c0_i32 = arith.constant 0 : i32
    %c0_i32_0 = arith.constant 0 : i32
    %c0_i32_1 = arith.constant 0 : i32
    return %arg0, %c0_i32, %c0_i32_0 : i32, i32, i32
  }
  func.func @transform_1(%arg0: i32) -> (i32, i32) {
    %c0_i32 = arith.constant 0 : i32
    %c0_i32_0 = arith.constant 0 : i32
    %c0_i32_1 = arith.constant 0 : i32
    return %c0_i32, %c0_i32_0 : i32, i32
  }
  func.func @transform_2(%arg0: i32) -> (i32, i32) {
    %c0_i32 = arith.constant 0 : i32
    %c0_i32_0 = arith.constant 0 : i32
    %c0_i32_1 = arith.constant 0 : i32
    return %c0_i32, %c0_i32_0 : i32, i32
  }
  func.func @transform_3(%arg0: i32) -> (i32, i32) {
    %c0_i32 = arith.constant 0 : i32
    %c0_i32_0 = arith.constant 0 : i32
    %c0_i32_1 = arith.constant 0 : i32
    return %c0_i32, %c0_i32_0 : i32, i32
  }
  func.func @transform_4(%arg0: i32) -> (i32, i32) {
    %c0_i32 = arith.constant 0 : i32
    %c0_i32_0 = arith.constant 0 : i32
    %c0_i32_1 = arith.constant 0 : i32
    return %c0_i32, %c0_i32_0 : i32, i32
  }
  func.func @transform_5(%arg0: i32) -> (i32, i32) {
    %c0_i32 = arith.constant 0 : i32
    %c0_i32_0 = arith.constant 0 : i32
    %c0_i32_1 = arith.constant 0 : i32
    return %c0_i32, %c0_i32_0 : i32, i32
  }
  func.func @transform_6(%arg0: i32) -> (i32, i32) {
    %c0_i32 = arith.constant 0 : i32
    %c0_i32_0 = arith.constant 0 : i32
    %c0_i32_1 = arith.constant 0 : i32
    return %c0_i32, %c0_i32_0 : i32, i32
  }
  func.func @transform_7(%arg0: i32) -> (i32, i32) {
    %c0_i32 = arith.constant 0 : i32
    %c0_i32_0 = arith.constant 0 : i32
    %c0_i32_1 = arith.constant 0 : i32
    return %c0_i32, %c0_i32_0 : i32, i32
  }
  func.func @transform_8(%arg0: i32) -> (i32, i32) {
    %c0_i32 = arith.constant 0 : i32
    %c0_i32_0 = arith.constant 0 : i32
    %c0_i32_1 = arith.constant 0 : i32
    return %c0_i32, %c0_i32_0 : i32, i32
  }
  func.func @transform_9(%arg0: i32) -> (i32, i32) {
    %c0_i32 = arith.constant 0 : i32
    %c0_i32_0 = arith.constant 0 : i32
    %c0_i32_1 = arith.constant 0 : i32
    return %c0_i32, %c0_i32_0 : i32, i32
  }
  func.func @transform_10(%arg0: i32) -> (i32, i32) {
    %c0_i32 = arith.constant 0 : i32
    %c0_i32_0 = arith.constant 0 : i32
    %c0_i32_1 = arith.constant 0 : i32
    return %c0_i32, %c0_i32_0 : i32, i32
  }
  func.func @transform_11(%arg0: i32) -> (i32, i32) {
    %c0_i32 = arith.constant 0 : i32
    %c0_i32_0 = arith.constant 0 : i32
    %c0_i32_1 = arith.constant 0 : i32
    return %c0_i32, %c0_i32_0 : i32, i32
  }
  func.func @transform_12(%arg0: i32) -> (i32, i32) {
    %c0_i32 = arith.constant 0 : i32
    %c0_i32_0 = arith.constant 0 : i32
    %c0_i32_1 = arith.constant 0 : i32
    return %c0_i32, %c0_i32_0 : i32, i32
  }
  func.func @transform_13(%arg0: i32) -> (i32, i32, i32) {
    %c0_i32 = arith.constant 0 : i32
    %c0_i32_0 = arith.constant 0 : i32
    %c0_i32_1 = arith.constant 0 : i32
    return %arg0, %c0_i32, %c0_i32_0 : i32, i32, i32
  }
}

</mosaic_0001>

<bundles_post_ra>
// kernel: tpu_custom_call.1
= control target key start
LH: loop header
LB: loop body
LE: loop exit
PB: predicated region body
PF: predicated region fallthrough
CT: control target
= control target key end

     0   :  { %s1755_s0 = inlined_call_operand.vmem [shape: f32[2,8,32], index: 0, kind: input, shape index: {}]   ;;  %s1756_s1 = inlined_call_operand.vmem [shape: f32[1,32], index: 1, kind: input, shape index: {}]   ;;  %s1757_s2 = inlined_call_operand.vmem [shape: f32[1,32], index: 2, kind: input, shape index: {}]   ;;  %s1758_s3 = inlined_call_operand.vmem [shape: f32[32,384], index: 3, kind: input, shape index: {}]   ;;  %s1759_s4 = inlined_call_operand.vmem [shape: f32[1,384], index: 4, kind: input, shape index: {}]   ;;  %s1760_s5 = inlined_call_operand.vmem [shape: f32[128,32], index: 5, kind: input, shape index: {}]   ;;  %s1761_s6 = inlined_call_operand.vmem [shape: f32[1,32], index: 6, kind: input, shape index: {}]   ;;  %s1762_s7 = inlined_call_operand.vmem [shape: f32[1,32], index: 7, kind: input, shape index: {}]   ;;  %s1763_s8 = inlined_call_operand.vmem [shape: f32[1,32], index: 8, kind: input, shape index: {}]   ;;  %s1764_s9 = inlined_call_operand.vmem [shape: f32[32,128], index: 9, kind: input, shape index: {}]   ;;  %s1765_s10 = inlined_call_operand.vmem [shape: f32[1,128], index: 10, kind: input, shape index: {}]   ;;  %s1766_s11 = inlined_call_operand.vmem [shape: f32[128,32], index: 11, kind: input, shape index: {}]   ;;  %s1767_s12 = inlined_call_operand.vmem [shape: f32[1,32], index: 12, kind: input, shape index: {}]   ;;  %s1768_s13 = inlined_call_operand.hbm [shape: f32[2,8,32], index: 13, kind: output, shape index: {}]  }
   0x1   :  { %1769 = sst [smem:[#allocation6_spill]] %s1755_s0 }
   0x2   :  { %1770 = sst [smem:[#allocation7_spill]] %s1756_s1 }
   0x3   :  { %1771 = sst [smem:[#allocation8_spill]] %s1757_s2 }
   0x4   :  { %18 = vsyncpa [#allocation3], 0 }
   0x5   :  { %20 = vsyncpa [#allocation3 + $0x1], 0  ;;  %s1420_s25 = smov 0   ;;  %s1422_s26 = smov 0  }
   0x6   :  { %s1424_s27 = smov 0   ;;  %s1426_s28 = smov 0  }
   0x7 LB: > { %s1441_s29 = sadd.s32 4294967295, %s1344_s28   ;;  %s1178_s30 = sadd.s32 4294967294, %s1344_s28   ;;  %s1344_s28 = sphi %s1426_s28, %s1782_s28   ;;  %s1340_s27 = sphi %s1424_s27, %s1781_s27   ;;  %s1336_s26 = sphi %s1422_s26, %s1780_s26   ;;  %s1332_s25 = sphi %s1420_s25, %s1779_s25  }
   0x8   : > { %s1445_s14 = sadd.s32 1, %s1344_s28   ;;  %s311_s15 = sadd.s32 1, %s1340_s27 }
   0x9   : > { %s308_s16 = ssub.s32 %s1344_s28, %s1445_s14  ;;  %p321_p0 = scmp.ne.s32.totalorder %s1340_s27, %s1336_s26 }
   0xa   : > { %p309_p1 = scmp.eq.s32.totalorder %s308_s16, 0  ;;  %p322_p2 = scmp.eq.s32.totalorder %s1441_s29, 1 }
   0xb   : > { %p327_p3 = scmp.ne.s32.totalorder %s1336_s26, %s1332_s25  ;;  %p328_p4 = scmp.eq.s32.totalorder %s1178_s30, 1 }
   0xc   : > { %s1456_s17 = scalar_select %p309_p1, %s1340_s27, %s311_s15  }
   0xd   : > { %p1458_p5 = por %p322_p2, %p321_p0  ;;  %p1462_p6 = por %p328_p4, %p327_p3 }
   0xe   : > { %1772 = sst [smem:[#allocation5_spill]] %s1456_s17  ;;  %p1181_p7 = scmp.ge.s32.totalorder %s1344_s28, 1 }
   0xf   : > { %p389_p8 = scmp.lt.s32.totalorder %s1344_s28, 3 }
  0x11   : > { %p390_p9 = pnand %p1181_p7, %p389_p8 }
  0x12   : > { %p432_p10 = scmp.lt.s32.totalorder (!%p390_p9), %s1441_s29, 1  ;;  %s1775_s0 = sld [smem:[#allocation6_spill]] (!%p390_p9) }
  0x13   : > { %393 = sbr.rel (%p390_p9) target bundleno = 1904 (0x770), region = 72  ;;  %s1776_s1 = sld [smem:[#allocation7_spill]] (!%p390_p9) }
  0x14   : > { %s1777_s2 = sld [smem:[#allocation8_spill]] (!%p390_p9)  ;;  %s1347_s30 = smov (!%p390_p9), 64  }
  0x15   : > { %s1348_s15 = smov (!%p390_p9), 32   ;;  %s1349_s16 = smov (!%p390_p9), 96  }
  0x16   : > { %s1205_s22 = sshll.u32 (!%p390_p9), %s1441_s29, 3 }
  0x18   : > { %s433_s20 = scalar_select %p432_p10, %s1441_s29, 1  ;;  %vm488_vm0 = vcmask 261120   ;;  %v1346_v2 = vmov 32.0   ;;  %v446_v14 = vld [vmem:[%s1758_s3 + $0x48] sm:$0xff]  ;;  %v447_v15 = vld [vmem:[%s1758_s3 + $0x50] sm:$0xff]  ;;  %v448_v16 = vld [vmem:[%s1758_s3 + $0x58] sm:$0xff] }
  0x19   : > { %1258 = vrcp.f32 %v1346_v2  ;;  %548 = vmatpush.msra.mxu0 %v446_v14  ;;  %568 = vmatpush.msra.mxu1 %v447_v15  ;;  %v443_v17 = vld [vmem:[%s1758_s3 + $0x30] sm:$0xff]  ;;  %v444_v18 = vld [vmem:[%s1758_s3 + $0x38] sm:$0xff]  ;;  %v445_v19 = vld [vmem:[%s1758_s3 + $0x40] sm:$0xff]  ;;  %vm624_vm5 = vcmask 64512  }
  0x1a   : > { %s1183_s21 = sshll.u32 %s433_s20, 3  ;;  %588 = vmatpush.msra.mxu2 %v448_v16  ;;  %v440_v20 = vld [vmem:[%s1758_s3 + $0x18] sm:$0xff]  ;;  %v441_v21 = vld [vmem:[%s1758_s3 + $0x20] sm:$0xff]  ;;  %v442_v22 = vld [vmem:[%s1758_s3 + $0x28] sm:$0xff]  ;;  %s429_s20 = sand.u32 1, %s1336_s26  }
  0x1b   : > { %s435_s24 = scalar_lea.vmem %s1775_s0, %s1183_s21  ;;  %549 = vmatpush.msra.mxu0 %v443_v17  ;;  %569 = vmatpush.msra.mxu1 %v444_v18  ;;  %v437_v23 = vld [vmem:[%s1758_s3] sm:$0xff]  ;;  %v438_v24 = vld [vmem:[%s1758_s3 + $0x8] sm:$0xff]  ;;  %v439_v25 = vld [vmem:[%s1758_s3 + $0x10] sm:$0xff]  ;;  %s1182_s21 = sshll.u32 %s429_s20, 3 }
  0x1c   : > { %v1473_v0 = vld [vmem:[%s435_s24] sm:$0xff]  ;;  %589 = vmatpush.msra.mxu2 %v445_v19  ;;  %s1104_s29 = scalar_lea.sflag [#allocation3], %s429_s20 }
  0x1d   : > { %v489_v1 = vsel %vm488_vm0, %v1473_v0, 0.0  ;;  %550 = vmatpush.msra.mxu0 %v440_v20  ;;  %570 = vmatpush.msra.mxu1 %v441_v21  ;;  %v1251_v35 = vld [vmem:[%s1776_s1] ss:$0 sm:$0xff] }
  0x1e   : > { %490 = vadd.xlane.f32.xlu0 %v489_v1  ;;  %590 = vmatpush.msra.mxu2 %v442_v22  ;;  %v1252_v38 = vld [vmem:[%s1777_s2] ss:$0 sm:$0xff] }
  0x1f   : > { %v1259_v3 = vpop.eup %1258  ;;  %551 = vmatpush.msra.mxu0 %v437_v23  ;;  %571 = vmatpush.msra.mxu1 %v438_v24  ;;  %v449_v41 = vld [vmem:[%s1759_s4] sm:$0x7] }
  0x20   : > { %v493_v4 = vmul.f32 32.0, %v1259_v3  ;;  %vm497_vm1 = vweird.f32 %v1259_v3  ;;  %591 = vmatpush.msra.mxu2 %v439_v25  ;;  %v527_v42 = vperm.slane %v449_v41, 0  ;;  %v528_v43 = vperm.slane %v449_v41, 1 }
  0x21   : > { %v529_v48 = vperm.slane %v449_v41, 2 }
  0x22   : > { %v494_v5 = vsub.f32 1.0, %v493_v4 }
  0x24   : > { %v495_v6 = vmul.f32 %v1259_v3, %v494_v5 }
  0x26   : > { %v496_v7 = vadd.f32 %v1259_v3, %v495_v6 }
  0x28   : > { %v1477_v8 = vsel %vm497_vm1, %v1259_v3, %v496_v7 }
  0x91   : > { %v491_v9 = vpop.xlane.xlu0 %490 }
  0x92   : > { %v499_v10 = vmul.f32 %v1477_v8, %v491_v9 }
  0x94   : > { %v500_v11 = vsub.f32 %v1473_v0, %v499_v10 }
  0x96   : > { %v501_v12 = vmul.f32 %v500_v11, %v500_v11 }
  0x98   : > { %v502_v13 = vsel %vm488_vm0, %v501_v12, 0.0 }
  0x99   : > { %503 = vadd.xlane.f32.xlu0 %v502_v13 }
 0x10c   : > { %v504_v26 = vpop.xlane.xlu0 %503 }
 0x10d   : > { %v505_v27 = vmul.f32 %v504_v26, %v1477_v8 }
 0x10f   : > { %v506_v28 = vadd.f32 1e-05, %v505_v27 }
 0x111   : > { %1260 = vrsqrt.f32 %v506_v28  ;;  %vm513_vm3 = vweird.f32 %v506_v28 }
 0x117   : > { %v1261_v29 = vpop.eup %1260 }
 0x118   : > { %v508_v30 = vmul.f32 %v1261_v29, %v506_v28  ;;  %vm514_vm2 = vweird.f32 %v1261_v29 }
 0x119   : > { %vm515_vm4 = vmor %vm513_vm3, %vm514_vm2 }
 0x11a   : > { %v509_v31 = vmul.f32 %v1261_v29, %v508_v30 }
 0x11c   : > { %v510_v32 = vmul.f32 0.5, %v509_v31 }
 0x11e   : > { %v511_v33 = vsub.f32 1.5, %v510_v32 }
 0x120   : > { %v512_v34 = vmul.f32 %v1261_v29, %v511_v33 }
 0x122   : > { %v516_v36 = vsel %vm515_vm4, %v1261_v29, %v512_v34 }
 0x123   : > { %v517_v37 = vmul.f32 %v516_v36, %v500_v11 }
 0x125   : > { %v521_v39 = vmul.f32 %v1251_v35, %v517_v37 }
 0x127   : > { %v525_v40 = vadd.f32 %v1252_v38, %v521_v39 }
 0x129   : > { %1184 = vmatmul.msk.f32.vlgmr.msra.gmra.mxu0 %vm488_vm0, %v525_v40  ;;  %1185 = vmatmul.msk.f32.vlgmr.msra.gmra.mxu1 %vm488_vm0, %v525_v40 }
 0x12a   : > { %1186 = vmatmul.msk.f32.vlgmr.msra.gmra.mxu2 %vm488_vm0, %v525_v40 }
 0x1a6   : > { %v553_v44 = vpop.f32.mrf.mxu0  ;;  %v573_v45 = vpop.f32.mrf.mxu1 }
 0x1a7   : > { %v554_v46 = vadd.f32 %v553_v44, %v527_v42  ;;  %v1531_v47 = vadd.f32 %v573_v45, %v528_v43 }
 0x1a9   : > { %799 = vrot.lane.b32.xlu0 %v1531_v47, %s1347_s30  ;;  %801 = vrot.lane.b32.xlu2 %v1531_v47, %s1348_s15 }
 0x1aa   : > { %597 = vrot.lane.b32.xlu1 %v554_v46, %s1349_s16 }
 0x1ad   : > { %v593_v49 = vpop.f32.mrf.mxu2 }
 0x1ae   : > { %v1537_v50 = vadd.f32 %v593_v49, %v529_v48 }
 0x1b1   : > { %902 = vrot.lane.b32.xlu2 %v1537_v50, %s1347_s30  ;;  %649 = vrot.lane.b32.xlu0 %v554_v46, %s1347_s30  ;;  %s1114_s30 = scalar_lea.hbm %s1768_s13, %s1205_s22 }
 0x1b2   : > { %675 = vrot.lane.b32.xlu1 %v554_v46, %s1348_s15  ;;  %s1118_s1 = sshll.u32 %s1114_s30, 4  ;;  %s1119_s1 = int_to_ptr.hbm [resolvable:$true] %s1118_s1 }
 0x1b3   : > { %s1296_s2 = sshra.s32 %s1119_s1, 4  ;;  %s1297_s2 = int_to_ptr.hbm [resolvable:$true] %s1296_s2 }
 0x1b4   : > { %s1298_s23 = scalar_lea.hbm %s1297_s2, 8  ;;  %p1303_p0 = scmp.lt.s32.totalorder %s1297_s2, %s1768_s13 }
 0x1b5   : > { %p1299_p11 = scmp.ne.s32.totalorder %s1297_s2, %s1298_s23 }
 0x1b7   : > { %p1300_p12 = pnand %p1299_p11, %p1458_p5 }
 0x1b9   : > { %p1301_p13 = pneg %p1300_p12 }
 0x1ba   : > { %900 = vrot.lane.b32.xlu1 %v1537_v50, %s1349_s16 }
 0x203   : > { %v802_v51 = vpop.permute.xlu2 %801 }
 0x20b   : > { %v903_v52 = vpop.permute.xlu2 %902 }
 0x20c   : > { %1199 = vmatpush.xpose.msk.msra.mxu3 %vm488_vm0, %v903_v52 }
 0x21b   : > { %v800_v53 = vpop.permute.xlu0 %799 }
 0x21c   : > { %v598_v54 = vpop.permute.xlu1 %597 }
 0x21d   : > { %1187 = vmatpush.xpose.msk.msrb.mxu0 %vm488_vm0, %v598_v54 }
 0x220   : > { %1188 = vmatmul.msk.f32.vlgmr.msrb.gmra.mxu0 %vm488_vm0, %v554_v46 }
 0x221   : > { %1190 = vmatpush.xpose.msk.msra.mxu0 %vm488_vm0, %v1531_v47 }
 0x223   : > { %v650_v55 = vpop.permute.xlu0 %649 }
 0x224   : > { %v676_v56 = vpop.permute.xlu1 %675  ;;  %670 = vmatpush.msrb.mxu2 %v650_v55 }
 0x225   : > { %1195 = vmatpush.xpose.msk.msrb.mxu0 %vm488_vm0, %v802_v51 }
 0x228   : > { %1191 = vmatmul.msk.f32.vlgmr.msra.gmra.mxu0 %vm488_vm0, %v676_v56 }
 0x22c   : > { %v901_v57 = vpop.permute.xlu1 %900 }
 0x22d   : > { %1200 = vmatmul.msk.f32.vlgmr.msra.gmra.mxu3 %vm488_vm0, %v901_v57 }
 0x230   : > { %1196 = vmatmul.msk.f32.vlgmr.msrb.gmra.mxu0 %vm488_vm0, %v800_v53 }
 0x29d   : > { %v620_v58 = vpop.f32.mrf.mxu0 }
 0x29e   : > { %v623_v59 = vmul.f32 0.17677669, %v620_v58 }
 0x2a0   : > { %v625_v60 = vsel %vm624_vm5, %v623_v59, -inf }
 0x2a1   : > { %626 = vmax.xlane.f32.xlu2 %v625_v60 }
 0x2a5   : > { %v699_v61 = vpop.f32.mrf.mxu0 }
 0x2a6   : > { %v702_v62 = vmul.f32 0.17677669, %v699_v61  ;;  %v452_v61 = vld [vmem:[%s1760_s5 + $0x10] sm:$0xff] }
 0x2a8   : > { %v703_v63 = vsel %vm624_vm5, %v702_v62, -inf }
 0x2a9   : > { %704 = vmax.xlane.f32.xlu0 %v703_v63 }
 0x2ad   : > { %v824_v1 = vpop.f32.mrf.mxu0 }
 0x2ae   : > { %v827_v2 = vmul.f32 0.17677669, %v824_v1 }
 0x2b0   : > { %v828_v3 = vsel %vm624_vm5, %v827_v2, -inf  ;;  %v925_v4 = vpop.f32.mrf.mxu3 }
 0x2b1   : > { %829 = vmax.xlane.f32.xlu2 %v828_v3  ;;  %v928_v5 = vmul.f32 0.17677669, %v925_v4  ;;  %v450_v4 = vld [vmem:[%s1760_s5] sm:$0xff] }
 0x2b3   : > { %v929_v6 = vsel %vm624_vm5, %v928_v5, -inf }
 0x2b9   : > { %930 = vmax.xlane.f32.xlu2 %v929_v6 }
 0x2bd   : > { %953 = vrot.lane.b32.xlu0 %v1537_v50, %s1348_s15  ;;  %s431_s15 = scalar_lea.vmem [#allocation2], %s1182_s21  ;;  %s1302_s21 = scalar_lea.hbm %s1768_s13, 16 }
 0x2be   : > { %p1304_p1 = scmp.lt.s32.totalorder %s1302_s21, %s1298_s23 }
 0x2c0   : > { %p1305_p2 = por %p1304_p1, %p1303_p0 }
 0x2c2   : > { %p1306_p3 = pnand %p1305_p2, %p1301_p13 }
 0x314   : > { %v627_v7 = vpop.xlane.xlu2 %626 }
 0x315   : > { %v628_v9 = vsub.f32 %v623_v59, %v627_v7  ;;  %v453_v59 = vld [vmem:[%s1760_s5 + $0x18] sm:$0xff] }
 0x317   : > { %v629_v10 = vmul.f32 1.442695, %v628_v9 }
 0x319   : > { %1262 = vpow2.f32 %v629_v10  ;;  %v457_v10 = vld [vmem:[%s1760_s5 + $0x38] sm:$0xff] }
 0x31a   : > { %768 = vmatpush.msra.mxu2 %v457_v10 }
 0x31c   : > { %v705_v11 = vpop.xlane.xlu0 %704 }
 0x31d   : > { %v706_v12 = vsub.f32 %v702_v62, %v705_v11  ;;  %v456_v11 = vld [vmem:[%s1760_s5 + $0x30] sm:$0xff] }
 0x31e   : > { %769 = vmatpush.msra.mxu2 %v456_v11 }
 0x31f   : > { %v1263_v13 = vpop.eup %1262  ;;  %v707_v14 = vmul.f32 1.442695, %v706_v12  ;;  %v455_v12 = vld [vmem:[%s1760_s5 + $0x28] sm:$0xff] }
 0x320   : > { %v631_v15 = vsel %vm624_vm5, %v1263_v13, 0.0  ;;  %770 = vmatpush.msra.mxu2 %v455_v12  ;;  %v481_v12 = vld [vmem:[%s1766_s11 + $0x58] sm:$0xff] }
 0x321   : > { %1264 = vpow2.f32 %v707_v14  ;;  %632 = vadd.xlane.f32.xlu1 %v631_v15 }
 0x324   : > { %v830_v16 = vpop.xlane.xlu2 %829 }
 0x325   : > { %v831_v17 = vsub.f32 %v827_v2, %v830_v16  ;;  %v451_v2 = vld [vmem:[%s1760_s5 + $0x8] sm:$0xff] }
 0x327   : > { %v1265_v18 = vpop.eup %1264  ;;  %v832_v19 = vmul.f32 1.442695, %v831_v17 }
 0x328   : > { %v709_v20 = vsel %vm624_vm5, %v1265_v18, 0.0 }
 0x329   : > { %1266 = vpow2.f32 %v832_v19  ;;  %710 = vadd.xlane.f32.xlu1 %v709_v20  ;;  %v465_v20 = vld [vmem:[%s1760_s5 + $0x78] sm:$0xff] }
 0x32c   : > { %v931_v21 = vpop.xlane.xlu2 %930 }
 0x32d   : > { %v932_v22 = vsub.f32 %v928_v5, %v931_v21 }
 0x32f   : > { %v1560_v23 = vpop.eup %1266  ;;  %v933_v24 = vmul.f32 1.442695, %v932_v22  ;;  %v954_v25 = vpop.permute.xlu0 %953 }
 0x330   : > { %974 = vmatpush.msra.mxu0 %v954_v25  ;;  %v834_v26 = vsel %vm624_vm5, %v1560_v23, 0.0 }
 0x331   : > { %1268 = vpow2.f32 %v933_v24  ;;  %835 = vadd.xlane.f32.xlu2 %v834_v26  ;;  %v464_v24 = vld [vmem:[%s1760_s5 + $0x70] sm:$0xff]  ;;  %v463_v26 = vld [vmem:[%s1760_s5 + $0x68] sm:$0xff] }
 0x337   : > { %v1564_v27 = vpop.eup %1268 }
 0x338   : > { %v935_v28 = vsel %vm624_vm5, %v1564_v27, 0.0 }
 0x339   : > { %936 = vadd.xlane.f32.xlu2 %v935_v28  ;;  %v462_v28 = vld [vmem:[%s1760_s5 + $0x60] sm:$0xff] }
 0x342   : > { %727 = vrot.lane.b32.xlu1 %v1531_v47, %s1349_s16  ;;  %s1116_s16 = sshll.u32 %s431_s15, 4  ;;  %s1117_s16 = int_to_ptr.vmem [resolvable:$true] %s1116_s16 }
 0x394   : > { %v633_v29 = vpop.xlane.xlu1 %632 }
 0x395   : > { %1270 = vrcp.f32 %v633_v29  ;;  %v645_v35 = vand.u32 2147483648, %v633_v29  ;;  %v643_v36 = vand.u32 2147483647, %v633_v29  ;;  %vm639_vm7 = vweird.f32 %v633_v29 }
 0x397   : > { %v646_v39 = vor.u32 1.1754944e-38, %v645_v35  ;;  %vm644_vm9 = vcmp.eq.f32.partialorder %v643_v36, 8.507059e+37 }
 0x39b   : > { %v1271_v30 = vpop.eup %1270 }
 0x39c   : > { %v635_v31 = vmul.f32 %v1271_v30, %v633_v29  ;;  %v711_v32 = vpop.xlane.xlu1 %710  ;;  %vm640_vm6 = vweird.f32 %v1271_v30 }
 0x39d   : > { %1272 = vrcp.f32 %v711_v32  ;;  %vm641_vm8 = vmor %vm639_vm7, %vm640_vm6  ;;  %v723_v48 = vand.u32 2147483648, %v711_v32  ;;  %vm717_vm11 = vweird.f32 %v711_v32  ;;  %v721_v49 = vand.u32 2147483647, %v711_v32 }
 0x39e   : > { %v636_v33 = vsub.f32 1.0, %v635_v31 }
 0x39f   : > { %v724_v53 = vor.u32 1.1754944e-38, %v723_v48  ;;  %vm722_vm13 = vcmp.eq.f32.partialorder %v721_v49, 8.507059e+37 }
 0x3a0   : > { %v637_v34 = vmul.f32 %v1271_v30, %v636_v33  ;;  %v460_v33 = vld [vmem:[%s1760_s5 + $0x50] sm:$0xff] }
 0x3a2   : > { %v638_v37 = vadd.f32 %v1271_v30, %v637_v34  ;;  %v458_v34 = vld [vmem:[%s1760_s5 + $0x40] sm:$0xff] }
 0x3a3   : > { %v1273_v38 = vpop.eup %1272 }
 0x3a4   : > { %v713_v40 = vmul.f32 %v1273_v38, %v711_v32  ;;  %v1570_v41 = vpop.xlane.xlu2 %835  ;;  %v642_v42 = vsel %vm641_vm8, %v1271_v30, %v638_v37  ;;  %vm718_vm10 = vweird.f32 %v1273_v38  ;;  %v461_v32 = vld [vmem:[%s1760_s5 + $0x58] sm:$0xff] }
 0x3a5   : > { %v647_v44 = vsel %vm644_vm9, %v646_v39, %v642_v42  ;;  %vm719_vm12 = vmor %vm717_vm11, %vm718_vm10  ;;  %vm842_vm4 = vweird.f32 %v1570_v41  ;;  %v846_v19 = vand.u32 2147483647, %v1570_v41 }
 0x3a6   : > { %v714_v43 = vsub.f32 1.0, %v713_v40  ;;  %v648_v45 = vmul.f32 %v1263_v13, %v647_v44 }
 0x3a7   : > { %vm847_vm7 = vcmp.eq.f32.partialorder %v846_v19, 8.507059e+37  ;;  %v473_v19 = vld [vmem:[%s1766_s11 + $0x18] sm:$0xff] }
 0x3a8   : > { %v715_v46 = vmul.f32 %v1273_v38, %v714_v43  ;;  %1189 = vmatmul.msk.f32.vlgmr.msrb.gmra.mxu2 %vm624_vm5, %v648_v45 }
 0x3aa   : > { %v716_v47 = vadd.f32 %v1273_v38, %v715_v46 }
 0x3ac   : > { %v937_v51 = vpop.xlane.xlu2 %936  ;;  %v720_v52 = vsel %vm719_vm12, %v1273_v38, %v716_v47 }
 0x3ad   : > { %1274 = vrcp.f32 %v937_v51  ;;  %v725_v54 = vsel %vm722_vm13, %v724_v53, %v720_v52  ;;  %v949_v62 = vand.u32 2147483648, %v937_v51  ;;  %v947_v1 = vand.u32 2147483647, %v937_v51  ;;  %v469_v53 = vld [vmem:[%s1764_s9 + $0x18] sm:$0xff] }
 0x3ae   : > { %v726_v58 = vmul.f32 %v1265_v18, %v725_v54  ;;  %vm943_vm15 = vweird.f32 %v937_v51  ;;  %1276 = vrcp.f32 %v1570_v41  ;;  %v848_v18 = vand.u32 2147483648, %v1570_v41  ;;  %v467_v54 = vld [vmem:[%s1764_s9 + $0x8] sm:$0xff] }
 0x3af   : > { %v950_v5 = vor.u32 1.1754944e-38, %v949_v62  ;;  %vm948_vm2 = vcmp.eq.f32.partialorder %v947_v1, 8.507059e+37 }
 0x3b0   : > { %v849_v25 = vor.u32 1.1754944e-38, %v848_v18  ;;  %v474_v18 = vld [vmem:[%s1766_s11 + $0x20] sm:$0xff] }
 0x3b3   : > { %v1275_v55 = vpop.eup %1274 }
 0x3b4   : > { %v939_v56 = vmul.f32 %v1275_v55, %v937_v51  ;;  %v728_v57 = vpop.permute.xlu1 %727  ;;  %vm944_vm14 = vweird.f32 %v1275_v55  ;;  %v1277_v13 = vpop.eup %1276 }
 0x3b5   : > { %748 = vmatpush.msrb.mxu1 %v728_v57  ;;  %vm945_vm1 = vmor %vm943_vm15, %vm944_vm14  ;;  %v838_v14 = vmul.f32 %v1277_v13, %v1570_v41  ;;  %vm843_vm3 = vweird.f32 %v1277_v13  ;;  %v1253_v41 = vld [vmem:[%s1761_s6] ss:$0 sm:$0xff]  ;;  %v484_v57 = vld [vmem:[%s1766_s11 + $0x70] sm:$0xff] }
 0x3b6   : > { %v940_v60 = vsub.f32 1.0, %v939_v56  ;;  %1192 = vmatmul.msk.f32.vlgmr.msrb.gmra.mxu1 %vm624_vm5, %v726_v58  ;;  %vm844_vm6 = vmor %vm842_vm4, %vm843_vm3  ;;  %v485_v56 = vld [vmem:[%s1766_s11 + $0x78] sm:$0xff]  ;;  %v483_v58 = vld [vmem:[%s1766_s11 + $0x68] sm:$0xff] }
 0x3b7   : > { %791 = vmatpush.msra.mxu1 %v453_v59  ;;  %v839_v15 = vsub.f32 1.0, %v838_v14  ;;  %1081 = vmatpush.msrb.mxu3 %v485_v56  ;;  %v478_v14 = vld [vmem:[%s1766_s11 + $0x40] sm:$0xff] }
 0x3b8   : > { %v941_v63 = vmul.f32 %v1275_v55, %v940_v60 }
 0x3b9   : > { %792 = vmatpush.msra.mxu1 %v452_v61  ;;  %v840_v16 = vmul.f32 %v1277_v13, %v839_v15  ;;  %1082 = vmatpush.msrb.mxu3 %v484_v57  ;;  %v482_v61 = vld [vmem:[%s1766_s11 + $0x60] sm:$0xff]  ;;  %v477_v15 = vld [vmem:[%s1766_s11 + $0x38] sm:$0xff] }
 0x3ba   : > { %v942_v3 = vadd.f32 %v1275_v55, %v941_v63 }
 0x3bb   : > { %793 = vmatpush.msra.mxu1 %v451_v2  ;;  %v841_v17 = vadd.f32 %v1277_v13, %v840_v16  ;;  %1083 = vmatpush.msrb.mxu3 %v483_v58  ;;  %v476_v16 = vld [vmem:[%s1766_s11 + $0x30] sm:$0xff] }
 0x3bc   : > { %v946_v6 = vsel %vm945_vm1, %v1275_v55, %v942_v3  ;;  %v466_v55 = vld [vmem:[%s1764_s9] sm:$0xff] }
 0x3bd   : > { %v951_v7 = vsel %vm948_vm2, %v950_v5, %v946_v6  ;;  %794 = vmatpush.msra.mxu1 %v450_v4  ;;  %v845_v22 = vsel %vm844_vm6, %v1277_v13, %v841_v17  ;;  %1084 = vmatpush.msrb.mxu3 %v482_v61  ;;  %v479_v13 = vld [vmem:[%s1766_s11 + $0x48] sm:$0xff] }
 0x3be   : > { %v952_v9 = vmul.f32 %v1564_v27, %v951_v7  ;;  %v850_v27 = vsel %vm847_vm7, %v849_v25, %v845_v22  ;;  %v475_v17 = vld [vmem:[%s1766_s11 + $0x28] sm:$0xff]  ;;  %v470_v22 = vld [vmem:[%s1766_s11] sm:$0xff] }
 0x3bf   : > { %870 = vmatpush.msrb.mxu1 %v1537_v50  ;;  %v454_v50 = vld [vmem:[%s1760_s5 + $0x20] sm:$0xff]  ;;  %v851_v30 = vmul.f32 %v1560_v23, %v850_v27  ;;  %v459_v23 = vld [vmem:[%s1760_s5 + $0x48] sm:$0xff]  ;;  %1085 = vmatpush.msrb.mxu3 %v481_v12 }
 0x3c0   : > { %1201 = vmatmul.msk.f32.vlgmr.msra.gmra.mxu0 %vm624_vm5, %v952_v9  ;;  %771 = vmatpush.msra.mxu2 %v454_v50  ;;  %v1255_v9 = vld [vmem:[%s1763_s8] ss:$0 sm:$0xff]  ;;  %v480_v50 = vld [vmem:[%s1766_s11 + $0x50] sm:$0xff] }
 0x3c1   : > { %1086 = vmatpush.msrb.mxu3 %v480_v50 }
 0x3c2   : > { %890 = vmatpush.msrb.mxu2 %v461_v32 }
 0x3c3   : > { %1087 = vmatpush.msrb.mxu3 %v479_v13 }
 0x3c4   : > { %891 = vmatpush.msrb.mxu2 %v460_v33 }
 0x3c5   : > { %1088 = vmatpush.msrb.mxu3 %v478_v14 }
 0x3c6   : > { %892 = vmatpush.msrb.mxu2 %v459_v23 }
 0x3c7   : > { %1089 = vmatpush.msrb.mxu3 %v477_v15 }
 0x3c8   : > { %893 = vmatpush.msrb.mxu2 %v458_v34 }
 0x3c9   : > { %1090 = vmatpush.msrb.mxu3 %v476_v16 }
 0x3cb   : > { %1091 = vmatpush.msrb.mxu3 %v475_v17 }
 0x3cd   : > { %1092 = vmatpush.msrb.mxu3 %v474_v18 }
 0x3cf   : > { %1093 = vmatpush.msrb.mxu3 %v473_v19 }
 0x42b   : > { %v672_v21 = vpop.f32.mrf.mxu2 }
 0x42c   : > { %1194 = vmatmul.msk.f32.vlgmr.msra.gmra.mxu1 %vm488_vm0, %v672_v21  ;;  %v471_v21 = vld [vmem:[%s1766_s11 + $0x8] sm:$0xff] }
 0x42d   : > { %994 = vmatpush.msra.mxu1 %v465_v20  ;;  %v472_v20 = vld [vmem:[%s1766_s11 + $0x10] sm:$0xff] }
 0x42e   : > { %1094 = vmatpush.msrb.mxu3 %v472_v20 }
 0x42f   : > { %995 = vmatpush.msra.mxu1 %v464_v24  ;;  %v1256_v24 = vld [vmem:[%s1765_s10] ss:$0 sm:$0xff] }
 0x430   : > { %1095 = vmatpush.msrb.mxu3 %v471_v21 }
 0x431   : > { %996 = vmatpush.msra.mxu1 %v463_v26 }
 0x432   : > { %1096 = vmatpush.msrb.mxu3 %v470_v22 }
 0x433   : > { %v750_v29 = vpop.f32.mrf.mxu1  ;;  %997 = vmatpush.msra.mxu1 %v462_v28 }
 0x434   : > { %1193 = vmatmul.msk.f32.vlgmr.msra.gmra.mxu2 %vm488_vm0, %v750_v29  ;;  %1197 = vmatmul.msk.f32.vlgmr.msrb.gmra.mxu1 %vm624_vm5, %v851_v30 }
 0x435   : > { %1060 = vmatpush.msra.mxu2 %v469_v53 }
 0x43d   : > { %v976_v31 = vpop.f32.mrf.mxu0 }
 0x43e   : > { %1202 = vmatmul.msk.f32.vlgmr.msra.gmra.mxu1 %vm488_vm0, %v976_v31 }
 0x4a9   : > { %v796_v35 = vpop.f32.mrf.mxu1 }
 0x4b1   : > { %v872_v36 = vpop.f32.mrf.mxu1 }
 0x4b2   : > { %1198 = vmatmul.msk.f32.vlgmr.msrb.gmra.mxu2 %vm488_vm0, %v872_v36 }
 0x4b7   : > { %v773_v37 = vpop.f32.mrf.mxu2 }
 0x4b8   : > { %v797_v38 = vadd.f32 %v796_v35, %v773_v37  ;;  %v1257_v35 = vld [vmem:[%s1767_s12] ss:$0 sm:$0xff] }
 0x4bb   : > { %v999_v42 = vpop.f32.mrf.mxu1 }
 0x535   : > { %v895_v39 = vpop.f32.mrf.mxu2 }
 0x536   : > { %v898_v40 = vadd.f32 %v895_v39, %v797_v38 }
 0x538   : > { %v1002_v43 = vadd.f32 %v999_v42, %v898_v40 }
 0x53a   : > { %v1007_v44 = vadd.f32 %v1253_v41, %v1002_v43 }
 0x53c   : > { %v1640_v45 = vadd.f32 %v1007_v44, %v1473_v0  ;;  %v468_v0 = vld [vmem:[%s1764_s9 + $0x10] sm:$0xff] }
 0x53d   : > { %1061 = vmatpush.msra.mxu2 %v468_v0 }
 0x53e   : > { %v1011_v46 = vsel %vm488_vm0, %v1640_v45, 0.0 }
 0x53f   : > { %1012 = vadd.xlane.f32.xlu2 %v1011_v46  ;;  %1062 = vmatpush.msra.mxu2 %v467_v54 }
 0x541   : > { %1063 = vmatpush.msra.mxu2 %v466_v55 }
 0x5b2   : > { %v1013_v47 = vpop.xlane.xlu2 %1012 }
 0x5b3   : > { %v1014_v48 = vmul.f32 %v1013_v47, %v1477_v8 }
 0x5b5   : > { %v1015_v49 = vsub.f32 %v1640_v45, %v1014_v48 }
 0x5b7   : > { %v1016_v51 = vmul.f32 %v1015_v49, %v1015_v49 }
 0x5b9   : > { %v1017_v52 = vsel %vm488_vm0, %v1016_v51, 0.0 }
 0x5ba   : > { %1018 = vadd.xlane.f32.xlu2 %v1017_v52 }
 0x62d   : > { %v1019_v59 = vpop.xlane.xlu2 %1018 }
 0x62e   : > { %v1020_v60 = vmul.f32 %v1019_v59, %v1477_v8  ;;  %v1254_v8 = vld [vmem:[%s1762_s7] ss:$0 sm:$0xff] }
 0x630   : > { %v1021_v62 = vadd.f32 1e-05, %v1020_v60 }
 0x632   : > { %1278 = vrsqrt.f32 %v1021_v62  ;;  %vm1028_vm8 = vweird.f32 %v1021_v62 }
 0x638   : > { %v1279_v63 = vpop.eup %1278 }
 0x639   : > { %v1023_v1 = vmul.f32 %v1279_v63, %v1021_v62  ;;  %vm1029_vm5 = vweird.f32 %v1279_v63 }
 0x63a   : > { %vm1030_vm9 = vmor %vm1028_vm8, %vm1029_vm5 }
 0x63b   : > { %v1024_v2 = vmul.f32 %v1279_v63, %v1023_v1 }
 0x63d   : > { %v1025_v3 = vmul.f32 0.5, %v1024_v2 }
 0x63f   : > { %v1026_v4 = vsub.f32 1.5, %v1025_v3 }
 0x641   : > { %v1027_v5 = vmul.f32 %v1279_v63, %v1026_v4 }
 0x643   : > { %v1031_v6 = vsel %vm1030_vm9, %v1279_v63, %v1027_v5 }
 0x644   : > { %v1032_v7 = vmul.f32 %v1031_v6, %v1015_v49 }
 0x646   : > { %v1036_v10 = vmul.f32 %v1254_v8, %v1032_v7 }
 0x648   : > { %v1040_v11 = vadd.f32 %v1255_v9, %v1036_v10 }
 0x64a   : > { %1203 = vmatmul.msk.f32.vlgmr.msra.gmra.mxu2 %vm488_vm0, %v1040_v11 }
 0x6cd   : > { %v1065_v25 = vpop.f32.mrf.mxu2 }
 0x6ce   : > { %v1066_v26 = vadd.f32 %v1256_v24, %v1065_v25 }
 0x6d0   : > { %v1069_v27 = vmul.f32 0.044715, %v1066_v26  ;;  %v1068_v33 = vmul.f32 0.5, %v1066_v26 }
 0x6d2   : > { %v1070_v28 = vmul.f32 %v1069_v27, %v1066_v26 }
 0x6d4   : > { %v1071_v29 = vmul.f32 %v1070_v28, %v1066_v26 }
 0x6d6   : > { %v1072_v30 = vadd.f32 %v1071_v29, %v1066_v26 }
 0x6d8   : > { %v1073_v31 = vmul.f32 0.7978846, %v1072_v30 }
 0x6da   : > { %1280 = vtanh.f32 %v1073_v31 }
 0x6e0   : > { %v1281_v32 = vpop.eup %1280 }
 0x6e1   : > { %v1075_v23 = vadd.f32 1.0, %v1281_v32 }
 0x6e3   : > { %v1076_v34 = vmul.f32 %v1075_v23, %v1068_v33 }
 0x6e5   : > { %1097 = vmatmul.f32.vlgmr.msrb.gmra.mxu3 %v1076_v34 }
 0x768   : > { %v1098_v36 = vpop.f32.mrf.mxu3 }
 0x769   : > { %v1099_v37 = vadd.f32 %v1257_v35, %v1098_v36 }
 0x76b   : > { %v1101_v38 = vadd.f32 %v1099_v37, %v1640_v45 }
 0x76d   : > { %1102 = vst.msk [vmem:[%s431_s15] sm:$0xff] %vm488_vm0, %v1101_v38 }
 0x76e   : > { %1309 = shalt.err (!%p1306_p3)
}
 0x76f   : > { %1208 = dma.vmem_to_hbm [thread:$0]  (%p1458_p5), %s1117_s16, 128, %s1119_s1, %s1104_s29  }
 0x770 PF: > { %p1214_p4 = scmp.ge.s32.totalorder %s1344_s28, 2  ;;  %s1130_s20 = sand.u32 1, %s1332_s25  }
 0x771   : > { %s1131_s30 = scalar_lea.sflag [#allocation3], %s1130_s20 }
 0x772   : > { %p1211_p7 = pnand %p1214_p4, %p1462_p6 }
 0x774   : > { %p1212_p8 = pneg %p1211_p7 }
 0x776   : > { %1327 = dma.done.wait (%p1212_p8), %s1131_s30, 128  }
 0x777   : > { %1329 = vsyncadd (%p1212_p8), %s1131_s30, 4294967168  ;;  %s1778_s2 = sld [smem:[#allocation5_spill]]  ;;  %p23_p9 = scmp.ge.s32.totalorder %s1445_s14, 4  }
 0x778   : > { %s1779_s25 = smov %s1336_s26  ;;  %s1780_s26 = smov %s1340_s27 }
 0x779   : > { %s1782_s28 = smov %s1445_s14  ;;  %25 = sbr.rel (!%p23_p9) target bundleno = 7 (0x7), region = 107 }
 0x77d   : > { %s1781_s27 = smov %s1778_s2 }
 0x77e   :  { %1137 = vsyncpa [#allocation3], 1 }
 0x77f   :  { %1139 = vsyncpa [#allocation3 + $0x1], 1 }

</bundles_post_ra>
